<compile_context>
chip_gen: v5e
topology: v5e:2x2
jax: 0.10.0
libtpu: 0.0.40
codegen_flags: <defaults>
</compile_context>

<pallas_src>
import jax
import jax.numpy as jnp
from jax.experimental import pallas as pl
from jax.experimental.pallas import tpu as pltpu


def _round_up(x, m):
    return ((x + m - 1) // m) * m


def _round_down(x, m):
    return (x // m) * m


def _vmem_capacity_bytes():
    try:
        return int(pltpu.get_tpu_info().vmem_capacity_bytes)
    except Exception:
        return 64 * 1024 * 1024  # conservative fallback (v7x-sized VMEM)


def _num_tensorcores_per_device():
    """Heuristic: multi-TensorCore (megacore-style) chips get a 2-way split."""
    try:
        kind = jax.devices()[0].device_kind.lower()
    except Exception:
        return 1
    if any(tag in kind for tag in ("v4", "v5p", "v7", "7x")):
        return 2
    return 1


def _choose_tiling(n, d, itemsize, max_tile_rows=None):
    """Pick (tile_rows, n_splits, tiles_per_split, tiles_needed, vmem_limit)."""
    vmem_cap = _vmem_capacity_bytes()
    if vmem_cap >= 100 * 1024 * 1024:        # v5e / v6e: 128 MiB physical VMEM
        vmem_limit = 96 * 1024 * 1024
    else:                                     # v7x: 64 MiB physical VMEM
        vmem_limit = 48 * 1024 * 1024
    budget = int(vmem_limit * 0.85)           # leave headroom for compiler scratch

    # Actual (lane-padded) VMEM footprint per tile row.
    d_lanes = _round_up(d, 128)
    per_row = (
        4 * 2 * d_lanes * itemsize   # 4 feature streams, double-buffered, lane-padded
        + 2 * 128 * 4                # is_same (tile, 1) block lane-pads to 128 f32 lanes, x2 bufs
        + 3 * d_lanes * 4            # f32 abs-diff / fused-reduce intermediates
        + 8 * 128 * 4                # assorted (tile, 1) f32 temps (lane-padded)
    )
    max_rows = max(8, budget // max(per_row, 1))

    cap = _round_up(max(n, 1), 8)
    if max_tile_rows is not None:
        cap = min(cap, _round_up(max(int(max_tile_rows), 8), 8))
    tile = max(8, min(_round_down(max_rows, 8), cap))   # multiple of 8

    tiles_needed = -(-n // tile)                         # cdiv
    two_cores = _num_tensorcores_per_device() >= 2
    n_splits = 2 if (two_cores and tiles_needed >= 8) else 1
    tiles_per_split = -(-tiles_needed // n_splits)
    return tile, n_splits, tiles_per_split, tiles_needed, vmem_limit


def _make_d3shape_loss_kernel(alpha, beta, gamma, inv_n, tile, tiles_per_split, n_true):
    alpha = float(alpha)
    beta = float(beta)
    gamma = float(gamma)
    inv_n = float(inv_n)

    def kernel(s1_ref, i1_ref, s2_ref, i2_ref, same_ref, out_ref, acc_ref):
        step = pl.program_id(1)

        @pl.when(step == 0)
        def _init():
            acc_ref[...] = jnp.zeros_like(acc_ref)

        # Global row index of this tile's first row (unclamped, so a fully
        # out-of-range "overhang" tile gets an all-false mask -> contributes 0).
        row_base = (pl.program_id(0) * tiles_per_split + step) * tile
        rows = row_base + jax.lax.broadcasted_iota(jnp.int32, (tile, 1), 0)
        valid = rows < n_true

        s1 = s1_ref[...]
        i1 = i1_ref[...]
        s2 = s2_ref[...]
        i2 = i2_ref[...]
        same = same_ref[...]                            # (tile, 1) float32

        # Per-row L1 distances: |diff| stays in the input dtype; the lane
        # reduction accumulates directly in f32 (no materialized f32 copies).
        d1 = jnp.sum(jnp.abs(s1 - s2), axis=1, keepdims=True, dtype=jnp.float32)
        d2 = jnp.sum(jnp.abs(i1 - i2), axis=1, keepdims=True, dtype=jnp.float32)
        d3 = jnp.sum(jnp.abs(s1 - i1), axis=1, keepdims=True, dtype=jnp.float32)

        # Factored blend: apply same / (1 - same) once across the three terms.
        quad = alpha * (d1 * d1 + d2 * d2 + d3 * d3)
        expo = beta * (jnp.exp(gamma * d1) + jnp.exp(gamma * d2) + jnp.exp(gamma * d3))
        tile_loss = jnp.where(valid, same * quad + (1.0 - same) * expo, 0.0)

        acc_ref[...] += jnp.sum(tile_loss, axis=(0, 1), keepdims=True)

        @pl.when(step == pl.num_programs(1) - 1)
        def _finalize():
            out_ref[...] = jnp.broadcast_to(acc_ref[...] * inv_n, out_ref.shape)

    return kernel


def d3shape_loss(sketch1_feat, imsk1_feat, sketch2_feat, imsk2_feat, is_same,
                 cp=0.2, cn=10, max_tile_rows=None):
    """Pallas equivalent of _D3Shape_loss.forward.

    feats: (N, D) float arrays (f32 or bf16).  is_same: any shape with N
    elements (0/1).  Returns a scalar float32 loss.
    """
    alpha = 1.0 / cp
    beta = float(cn)
    gamma = -2.77 / cn

    n, d = sketch1_feat.shape
    itemsize = jnp.dtype(sketch1_feat.dtype).itemsize
    is_same_flat = jnp.reshape(is_same, (n, 1)).astype(jnp.float32)

    tile, n_splits, tiles_per_split, tiles_needed, vmem_limit = _choose_tiling(
        n, d, itemsize, max_tile_rows=max_tile_rows)

    kernel = _make_d3shape_loss_kernel(
        alpha, beta, gamma, 1.0 / n, tile, tiles_per_split, n)

    # Only clamp the block index when the split rounding creates an overhang
    # tile; its contribution is masked to zero inside the kernel anyway.
    overhang = n_splits * tiles_per_split > tiles_needed
    last_block = tiles_needed - 1

    def _row_block(c, i):
        b = c * tiles_per_split + i
        if overhang:
            b = jnp.minimum(b, last_block)
        return b

    feat_spec = pl.BlockSpec((tile, d), lambda c, i: (_row_block(c, i), 0))
    same_spec = pl.BlockSpec((tile, 1), lambda c, i: (_row_block(c, i), 0))
    # One fully-aligned (8, 128) accumulator block per split (megacore-safe),
    # written only once (on the last reduction step).
    out_spec = pl.BlockSpec((8, 128), lambda c, i: (c, 0))

    out = pl.pallas_call(
        kernel,
        out_shape=jax.ShapeDtypeStruct((8 * n_splits, 128), jnp.float32),
        grid=(n_splits, tiles_per_split),
        in_specs=[feat_spec, feat_spec, feat_spec, feat_spec, same_spec],
        out_specs=out_spec,
        scratch_shapes=[pltpu.VMEM((1, 1), jnp.float32)],
        compiler_params=pltpu.CompilerParams(
            dimension_semantics=("parallel", "arbitrary"),
            vmem_limit_bytes=vmem_limit,
        ),
    )(sketch1_feat, imsk1_feat, sketch2_feat, imsk2_feat, is_same_flat)

    # Each split's partial (already scaled by 1/N) is replicated over its
    # (8, 128) block; read one element per split and sum.
    partials = out.reshape(n_splits, 8, 128)[:, 0, 0]
    return jnp.sum(partials)


def _reference(sketch1_feat, imsk1_feat, sketch2_feat, imsk2_feat, is_same,
               cp=0.2, cn=10):
    alpha = 1.0 / cp
    beta = float(cn)
    gamma = -2.77 / cn

    f32 = jnp.float32
    s1 = sketch1_feat.astype(f32)
    i1 = imsk1_feat.astype(f32)
    s2 = sketch2_feat.astype(f32)
    i2 = imsk2_feat.astype(f32)

    def _d(f1, f2):
        return jnp.sum(jnp.abs(f1 - f2), axis=1)

    def _l(dist, s):
        return s * alpha * dist * dist + (1.0 - s) * beta * jnp.exp(gamma * dist)

    d1 = _d(s1, s2)
    d2 = _d(i1, i2)
    d3 = _d(s1, i1)
    s = is_same.reshape(-1).astype(f32)
    return jnp.mean(_l(d1, s) + _l(d2, s) + _l(d3, s))


if __name__ == "__main__":
    key = jax.random.PRNGKey(0)

    # Case 1: small shapes matching the module (N=8 pairs, D=32 feature dims);
    # single-tile path.
    N, D = 8, 32
    k1, k2, k3, k4, k5, k6 = jax.random.split(key, 6)
    sketch1 = jax.random.normal(k1, (N, D), dtype=jnp.float32)
    imsk1 = jax.random.normal(k2, (N, D), dtype=jnp.float32)
    sketch2 = jax.random.normal(k3, (N, D), dtype=jnp.float32)
    imsk2 = jax.random.normal(k4, (N, D), dtype=jnp.float32)
    is_same = jax.random.bernoulli(k5, 0.5, (N, 1)).astype(jnp.float32)

    loss = d3shape_loss(sketch1, imsk1, sketch2, imsk2, is_same)
    loss = jax.block_until_ready(loss)
    ref = _reference(sketch1, imsk1, sketch2, imsk2, is_same)
    assert jnp.allclose(loss, ref, rtol=1e-4, atol=1e-5), (loss, ref)

    # Case 2: exercises the multi-tile pipelined reduction and the in-kernel
    # tail-tile masking (N=40 rows, forced 16-row tiles -> 3 tiles, last partial).
    N2, D2 = 40, 32
    ka, kb, kc, kd, ke = jax.random.split(k6, 5)
    s1b = jax.random.normal(ka, (N2, D2), dtype=jnp.float32)
    i1b = jax.random.normal(kb, (N2, D2), dtype=jnp.float32)
    s2b = jax.random.normal(kc, (N2, D2), dtype=jnp.float32)
    i2b = jax.random.normal(kd, (N2, D2), dtype=jnp.float32)
    sameb = jax.random.bernoulli(ke, 0.5, (N2, 1)).astype(jnp.float32)

    loss2 = d3shape_loss(s1b, i1b, s2b, i2b, sameb, max_tile_rows=16)
    loss2 = jax.block_until_ready(loss2)
    ref2 = _reference(s1b, i1b, s2b, i2b, sameb)
    assert jnp.allclose(loss2, ref2, rtol=1e-4, atol=1e-5), (loss2, ref2)

    # Case 3: bf16 inputs (halves HBM bytes for this bandwidth-bound loss);
    # |diff| is rounded to bf16 before the f32 lane accumulation, so the
    # tolerance vs the all-f32 reference is looser.
    s1c = s1b.astype(jnp.bfloat16)
    i1c = i1b.astype(jnp.bfloat16)
    s2c = s2b.astype(jnp.bfloat16)
    i2c = i2b.astype(jnp.bfloat16)

    loss3 = d3shape_loss(s1c, i1c, s2c, i2c, sameb, max_tile_rows=16)
    loss3 = jax.block_until_ready(loss3)
    ref3 = _reference(s1c, i1c, s2c, i2c, sameb)
    assert jnp.allclose(loss3, ref3, rtol=5e-2, atol=5e-2), (loss3, ref3)

    print("KERNEL_OK")
</pallas_src>

<mosaic_0001>
module attributes {stable_mosaic.version = 11 : i64} {
  func.func @kernel(%arg0: i32, %arg1: i32, %arg2: memref<8x32xf32, #tpu.memory_space<vmem>>, %arg3: memref<8x32xf32, #tpu.memory_space<vmem>>, %arg4: memref<8x32xf32, #tpu.memory_space<vmem>>, %arg5: memref<8x32xf32, #tpu.memory_space<vmem>>, %arg6: memref<8x1xf32, #tpu.memory_space<vmem>>, %arg7: memref<8x128xf32, #tpu.memory_space<vmem>>, %arg8: memref<1x1xf32, #tpu.memory_space<vmem>>) attributes {dimension_semantics = [#tpu.dimension_semantics<parallel>, #tpu.dimension_semantics<arbitrary>], iteration_bounds = array<i64: 1, 1>, scalar_prefetch = 0 : i64, scratch_operands = 1 : i64, tpu.core_type = #tpu.core_type<tc>, window_params = [{transform_indices = @transform_0, window_bounds = array<i64: 8, 32>}, {transform_indices = @transform_1, window_bounds = array<i64: 8, 32>}, {transform_indices = @transform_2, window_bounds = array<i64: 8, 32>}, {transform_indices = @transform_3, window_bounds = array<i64: 8, 32>}, {transform_indices = @transform_4, window_bounds = array<i64: 8, 1>}, {transform_indices = @transform_5, window_bounds = array<i64: 8, 128>}]} {
    %c0_i32 = arith.constant 0 : i32
    %0 = arith.cmpi eq, %arg1, %c0_i32 : i32
    %1 = arith.extui %0 : i1 to i32
    %c0_i32_0 = arith.constant 0 : i32
    %2 = arith.cmpi ne, %1, %c0_i32_0 : i32
    scf.if %2 {
      %cst_27 = arith.constant 0.000000e+00 : f32
      %66 = vector.broadcast %cst_27 : f32 to vector<1x1xf32>
      %c0_28 = arith.constant 0 : index
      %c0_29 = arith.constant 0 : index
      %67 = vector.load %arg8[%c0_28, %c0_29] : memref<1x1xf32, #tpu.memory_space<vmem>>, vector<1x1xf32>
      tpu.vector_store %arg8[%c0_28, %c0_29], %66 {strides = array<i32>} : memref<1x1xf32, #tpu.memory_space<vmem>>, vector<1x1xf32>,
    } else {
    }
    %c1_i32 = arith.constant 1 : i32
    %3 = arith.muli %arg0, %c1_i32 : i32
    %4 = arith.addi %3, %arg1 : i32
    %c8_i32 = arith.constant 8 : i32
    %5 = arith.muli %4, %c8_i32 : i32
    %6 = tpu.iota {dimensions = array<i32: 0>} : vector<8x1xi32>
    %7 = vector.broadcast %5 : i32 to vector<8x1xi32>
    %8 = arith.addi %7, %6 : vector<8x1xi32>
    %c8_i32_1 = arith.constant 8 : i32
    %9 = vector.broadcast %c8_i32_1 : i32 to vector<8x1xi32>
    %10 = arith.cmpi slt, %8, %9 : vector<8x1xi32>
    %c0 = arith.constant 0 : index
    %c0_2 = arith.constant 0 : index
    %11 = vector.load %arg2[%c0, %c0_2] : memref<8x32xf32, #tpu.memory_space<vmem>>, vector<8x32xf32>
    %c0_3 = arith.constant 0 : index
    %c0_4 = arith.constant 0 : index
    %12 = vector.load %arg3[%c0_3, %c0_4] : memref<8x32xf32, #tpu.memory_space<vmem>>, vector<8x32xf32>
    %c0_5 = arith.constant 0 : index
    %c0_6 = arith.constant 0 : index
    %13 = vector.load %arg4[%c0_5, %c0_6] : memref<8x32xf32, #tpu.memory_space<vmem>>, vector<8x32xf32>
    %c0_7 = arith.constant 0 : index
    %c0_8 = arith.constant 0 : index
    %14 = vector.load %arg5[%c0_7, %c0_8] : memref<8x32xf32, #tpu.memory_space<vmem>>, vector<8x32xf32>
    %c0_9 = arith.constant 0 : index
    %c0_10 = arith.constant 0 : index
    %15 = vector.load %arg6[%c0_9, %c0_10] : memref<8x1xf32, #tpu.memory_space<vmem>>, vector<8x1xf32>
    %16 = arith.subf %11, %13 : vector<8x32xf32>
    %17 = math.absf %16 : vector<8x32xf32>
    %cst = arith.constant dense<0.000000e+00> : vector<8xf32>
    %18 = vector.multi_reduction <add>, %17, %cst [1] : vector<8x32xf32> to vector<8xf32>
    %19 = vector.shape_cast %18 : vector<8xf32> to vector<8x1xf32>
    %20 = arith.subf %12, %14 : vector<8x32xf32>
    %21 = math.absf %20 : vector<8x32xf32>
    %cst_11 = arith.constant dense<0.000000e+00> : vector<8xf32>
    %22 = vector.multi_reduction <add>, %21, %cst_11 [1] : vector<8x32xf32> to vector<8xf32>
    %23 = vector.shape_cast %22 : vector<8xf32> to vector<8x1xf32>
    %24 = arith.subf %11, %12 : vector<8x32xf32>
    %25 = math.absf %24 : vector<8x32xf32>
    %cst_12 = arith.constant dense<0.000000e+00> : vector<8xf32>
    %26 = vector.multi_reduction <add>, %25, %cst_12 [1] : vector<8x32xf32> to vector<8xf32>
    %27 = vector.shape_cast %26 : vector<8xf32> to vector<8x1xf32>
    %28 = arith.mulf %19, %19 : vector<8x1xf32>
    %29 = arith.mulf %23, %23 : vector<8x1xf32>
    %30 = arith.addf %28, %29 : vector<8x1xf32>
    %31 = arith.mulf %27, %27 : vector<8x1xf32>
    %32 = arith.addf %30, %31 : vector<8x1xf32>
    %cst_13 = arith.constant 5.000000e+00 : f32
    %33 = vector.broadcast %cst_13 : f32 to vector<8x1xf32>
    %34 = arith.mulf %33, %32 : vector<8x1xf32>
    %cst_14 = arith.constant -2.770000e-01 : f32
    %35 = vector.broadcast %cst_14 : f32 to vector<8x1xf32>
    %36 = arith.mulf %35, %19 : vector<8x1xf32>
    %37 = math.exp %36 : vector<8x1xf32>
    %cst_15 = arith.constant -2.770000e-01 : f32
    %38 = vector.broadcast %cst_15 : f32 to vector<8x1xf32>
    %39 = arith.mulf %38, %23 : vector<8x1xf32>
    %40 = math.exp %39 : vector<8x1xf32>
    %41 = arith.addf %37, %40 : vector<8x1xf32>
    %cst_16 = arith.constant -2.770000e-01 : f32
    %42 = vector.broadcast %cst_16 : f32 to vector<8x1xf32>
    %43 = arith.mulf %42, %27 : vector<8x1xf32>
    %44 = math.exp %43 : vector<8x1xf32>
    %45 = arith.addf %41, %44 : vector<8x1xf32>
    %cst_17 = arith.constant 1.000000e+01 : f32
    %46 = vector.broadcast %cst_17 : f32 to vector<8x1xf32>
    %47 = arith.mulf %46, %45 : vector<8x1xf32>
    %48 = arith.mulf %15, %34 : vector<8x1xf32>
    %cst_18 = arith.constant 1.000000e+00 : f32
    %49 = vector.broadcast %cst_18 : f32 to vector<8x1xf32>
    %50 = arith.subf %49, %15 : vector<8x1xf32>
    %51 = arith.mulf %50, %47 : vector<8x1xf32>
    %52 = arith.addf %48, %51 : vector<8x1xf32>
    %cst_19 = arith.constant 0.000000e+00 : f32
    %53 = vector.broadcast %cst_19 : f32 to vector<8x1xf32>
    %54 = arith.select %10, %52, %53 : vector<8x1xi1>, vector<8x1xf32>
    %c0_20 = arith.constant 0 : index
    %c0_21 = arith.constant 0 : index
    %55 = vector.load %arg8[%c0_20, %c0_21] : memref<1x1xf32, #tpu.memory_space<vmem>>, vector<1x1xf32>
    %56 = vector.shape_cast %54 : vector<8x1xf32> to vector<1x8x1xf32>
    %cst_22 = arith.constant dense<0.000000e+00> : vector<1xf32>
    %57 = vector.multi_reduction <add>, %56, %cst_22 [1, 2] : vector<1x8x1xf32> to vector<1xf32>
    %58 = vector.shape_cast %57 : vector<1xf32> to vector<1x1x1xf32>
    %59 = vector.extract %58[0, 0, 0] : f32 from vector<1x1x1xf32>
    %60 = vector.broadcast %59 : f32 to vector<1x1xf32>
    %61 = arith.addf %55, %60 : vector<1x1xf32>
    %c0_23 = arith.constant 0 : index
    %c0_24 = arith.constant 0 : index
    %62 = vector.load %arg8[%c0_23, %c0_24] : memref<1x1xf32, #tpu.memory_space<vmem>>, vector<1x1xf32>
    tpu.vector_store %arg8[%c0_23, %c0_24], %61 {strides = array<i32>} : memref<1x1xf32, #tpu.memory_space<vmem>>, vector<1x1xf32>,
    %c0_i32_25 = arith.constant 0 : i32
    %63 = arith.cmpi eq, %arg1, %c0_i32_25 : i32
    %64 = arith.extui %63 : i1 to i32
    %c0_i32_26 = arith.constant 0 : i32
    %65 = arith.cmpi ne, %64, %c0_i32_26 : i32
    scf.if %65 {
      %c0_27 = arith.constant 0 : index
      %c0_28 = arith.constant 0 : index
      %66 = vector.load %arg8[%c0_27, %c0_28] : memref<1x1xf32, #tpu.memory_space<vmem>>, vector<1x1xf32>
      %cst_29 = arith.constant 1.250000e-01 : f32
      %67 = vector.broadcast %cst_29 : f32 to vector<1x1xf32>
      %68 = arith.mulf %66, %67 : vector<1x1xf32>
      %69 = vector.shape_cast %68 : vector<1x1xf32> to vector<1x1xf32>
      %70 = vector.broadcast %69 : vector<1x1xf32> to vector<8x128xf32>
      %c0_30 = arith.constant 0 : index
      %c0_31 = arith.constant 0 : index
      %71 = vector.load %arg7[%c0_30, %c0_31] : memref<8x128xf32, #tpu.memory_space<vmem>>, vector<8x128xf32>
      tpu.vector_store %arg7[%c0_30, %c0_31], %70 {strides = array<i32>} : memref<8x128xf32, #tpu.memory_space<vmem>>, vector<8x128xf32>,
    } else {
    }
    return
  }
  func.func @transform_0(%arg0: i32, %arg1: i32) -> (i32, i32) {
    %c1_i32 = arith.constant 1 : i32
    %0 = arith.muli %arg0, %c1_i32 : i32
    %1 = arith.addi %0, %arg1 : i32
    %c0_i32 = arith.constant 0 : i32
    %c0_i32_0 = arith.constant 0 : i32
    return %1, %c0_i32 : i32, i32
  }
  func.func @transform_1(%arg0: i32, %arg1: i32) -> (i32, i32) {
    %c1_i32 = arith.constant 1 : i32
    %0 = arith.muli %arg0, %c1_i32 : i32
    %1 = arith.addi %0, %arg1 : i32
    %c0_i32 = arith.constant 0 : i32
    %c0_i32_0 = arith.constant 0 : i32
    return %1, %c0_i32 : i32, i32
  }
  func.func @transform_2(%arg0: i32, %arg1: i32) -> (i32, i32) {
    %c1_i32 = arith.constant 1 : i32
    %0 = arith.muli %arg0, %c1_i32 : i32
    %1 = arith.addi %0, %arg1 : i32
    %c0_i32 = arith.constant 0 : i32
    %c0_i32_0 = arith.constant 0 : i32
    return %1, %c0_i32 : i32, i32
  }
  func.func @transform_3(%arg0: i32, %arg1: i32) -> (i32, i32) {
    %c1_i32 = arith.constant 1 : i32
    %0 = arith.muli %arg0, %c1_i32 : i32
    %1 = arith.addi %0, %arg1 : i32
    %c0_i32 = arith.constant 0 : i32
    %c0_i32_0 = arith.constant 0 : i32
    return %1, %c0_i32 : i32, i32
  }
  func.func @transform_4(%arg0: i32, %arg1: i32) -> (i32, i32) {
    %c1_i32 = arith.constant 1 : i32
    %0 = arith.muli %arg0, %c1_i32 : i32
    %1 = arith.addi %0, %arg1 : i32
    %c0_i32 = arith.constant 0 : i32
    %c0_i32_0 = arith.constant 0 : i32
    return %1, %c0_i32 : i32, i32
  }
  func.func @transform_5(%arg0: i32, %arg1: i32) -> (i32, i32) {
    %c0_i32 = arith.constant 0 : i32
    %c0_i32_0 = arith.constant 0 : i32
    return %arg0, %c0_i32 : i32, i32
  }
}

</mosaic_0001>

<bundles_post_ra>
// kernel: tpu_custom_call.1
= control target key start
LH: loop header
LB: loop body
LE: loop exit
PB: predicated region body
PF: predicated region fallthrough
CT: control target
= control target key end

     0   :  { %10 = vsyncpa [#allocation4], 0  ;;  %s397_s0 = inlined_call_operand.vmem [shape: f32[8,32], index: 0, kind: input, shape index: {}]   ;;  %s398_s1 = inlined_call_operand.hbm [shape: f32[8,32], index: 1, kind: input, shape index: {}]   ;;  %s399_s2 = inlined_call_operand.hbm [shape: f32[8,32], index: 2, kind: input, shape index: {}]   ;;  %s400_s3 = inlined_call_operand.hbm [shape: f32[8,32], index: 3, kind: input, shape index: {}]   ;;  %s401_s4 = inlined_call_operand.vmem [shape: f32[8,1], index: 4, kind: input, shape index: {}]   ;;  %s402_s5 = inlined_call_operand.hbm [shape: f32[8,128], index: 5, kind: output, shape index: {}]  }
   0x1   :  { %11 = vsyncpa [#allocation7], 0  ;;  %s43_s20 = sshll.u32 %s399_s2, 4  ;;  %s44_s20 = int_to_ptr.hbm [resolvable:$true] %s43_s20 }
   0x2   :  { %12 = vsyncpa [#allocation5], 0  ;;  %s341_s21 = smov [#allocation6]   ;;  %s29_s25 = sshll.u32 %s398_s1, 4  ;;  %s30_s25 = int_to_ptr.hbm [resolvable:$true] %s29_s25 }
   0x3   :  { %s45_s22 = sshll.u32 %s341_s21, 4  ;;  %s342_s26 = smov [#allocation3]   ;;  %s46_s22 = int_to_ptr.vmem [resolvable:$true] %s45_s22 }
   0x4   :  { %48 = dma.hbm_to_vmem [thread:$0]  %s44_s20, 128, %s46_s22, [#allocation7]  }
   0x5   :  { %s31_s27 = sshll.u32 %s342_s26, 4  ;;  %s57_s30 = sshll.u32 %s400_s3, 4  ;;  %s32_s27 = int_to_ptr.vmem [resolvable:$true] %s31_s27  ;;  %s58_s30 = int_to_ptr.hbm [resolvable:$true] %s57_s30 }
   0x6   :  { %34 = dma.hbm_to_vmem [thread:$0]  %s30_s25, 128, %s32_s27, [#allocation4]  }
   0x7   :  { %s343_s2 = smov [#allocation8]  }
   0x8   :  { %s59_s6 = sshll.u32 %s343_s2, 4  ;;  %s60_s6 = int_to_ptr.vmem [resolvable:$true] %s59_s6 }
   0x9   :  { %62 = dma.hbm_to_vmem [thread:$0]  %s58_s30, 128, %s60_s6, [#allocation7]  }
   0xa   :  { %335 = dma.done.wait [#allocation4], 128  }
   0xb   :  { %336 = vsyncadd [#allocation4], 4294967168 }
   0xc   :  { %337 = dma.done.wait [#allocation7], 256  }
   0xd   :  { %338 = vsyncadd [#allocation7], 4294967040  ;;  %v121_v0 = vld [vmem:[%s397_s0] sm:$0xff]  ;;  %v123_v1 = vld [vmem:[#allocation6] sm:$0xff]  ;;  %vm128_vm0 = vcmask 261120   ;;  %vm166_vm1 = vcmask 7168  }
   0xe   :  { %v122_v2 = vld [vmem:[#allocation3] sm:$0xff]  ;;  %v126_v3 = vsub.f32 %v121_v0, %v123_v1  ;;  %v124_v4 = vld [vmem:[#allocation8] sm:$0xff]  ;;  %vm112_vm2 = vcmask 0   ;;  %v344_v40 = vmov 0.0   ;;  %v345_v48 = vmov 0   ;;  %s346_s8 = smov [#allocation9]  }
   0xf   :  { %v137_v5 = vsub.f32 %v121_v0, %v122_v2  ;;  %v132_v7 = vsub.f32 %v122_v2, %v124_v4  ;;  %v125_v31 = vld [vmem:[%s401_s4] sm:$0xff]  ;;  %113 = vst.msk [vmem:[#allocation2] sm:$0x1] %vm112_vm2, %v344_v40  ;;  %231 = vset.pattern.permute.xlu2 %v345_v48  ;;  %232 = vset.pattern.permute.xlu0 %v345_v48  ;;  %s198_s9 = sshll.u32 %s346_s8, 4  ;;  %s200_s12 = sshll.u32 %s402_s5, 4  ;;  %s199_s9 = int_to_ptr.vmem [resolvable:$true] %s198_s9  ;;  %s201_s12 = int_to_ptr.hbm [resolvable:$true] %s200_s12 }
  0x10   :  { %v127_v6 = vand.u32 2147483647, %v126_v3  ;;  %v161_v34 = vsub.f32 1.0, %v125_v31 }
  0x11   :  { %v138_v8 = vand.u32 2147483647, %v137_v5  ;;  %v133_v11 = vand.u32 2147483647, %v132_v7 }
  0x12   :  { %v129_v9 = vsel %vm128_vm0, %v127_v6, 0.0 }
  0x13   :  { %v139_v10 = vsel %vm128_vm0, %v138_v8, 0.0  ;;  %130 = vadd.xlane.f32.xlu0 %v129_v9  ;;  %v134_v12 = vsel %vm128_vm0, %v133_v11, 0.0 }
  0x14   :  { %140 = vadd.xlane.f32.xlu1 %v139_v10 }
  0x16   :  { %v165_v49 = vld [vmem:[#allocation2] sm:$0x1] }
  0x1b   :  { %135 = vadd.xlane.f32.xlu0 %v134_v12 }
  0x86   :  { %v131_v13 = vpop.xlane.xlu0 %130 }
  0x87   :  { %v141_v14 = vpop.xlane.xlu1 %140  ;;  %v148_v15 = vmul.f32 -0.277, %v131_v13  ;;  %v142_v23 = vmul.f32 %v131_v13, %v131_v13 }
  0x88   :  { %v155_v16 = vmul.f32 -0.277, %v141_v14  ;;  %v145_v25 = vmul.f32 %v141_v14, %v141_v14 }
  0x89   :  { %v149_v17 = vmul.f32 1.442695, %v148_v15 }
  0x8a   :  { %v156_v19 = vmul.f32 1.442695, %v155_v16 }
  0x8b   :  { %233 = vpow2.f32 %v149_v17 }
  0x8c   :  { %235 = vpow2.f32 %v156_v19 }
  0x8e   :  { %v136_v18 = vpop.xlane.xlu0 %135 }
  0x8f   :  { %v151_v20 = vmul.f32 -0.277, %v136_v18  ;;  %v143_v21 = vmul.f32 %v136_v18, %v136_v18 }
  0x91   :  { %v152_v22 = vmul.f32 1.442695, %v151_v20  ;;  %v144_v24 = vadd.f32 %v143_v21, %v142_v23  ;;  %v234_v26 = vpop.eup %233 }
  0x92   :  { %v236_v27 = vpop.eup %235 }
  0x93   :  { %237 = vpow2.f32 %v152_v22  ;;  %v146_v28 = vadd.f32 %v145_v25, %v144_v24 }
  0x95   :  { %v147_v32 = vmul.f32 5.0, %v146_v28 }
  0x97   :  { %v160_v36 = vmul.f32 %v147_v32, %v125_v31 }
  0x99   :  { %v238_v29 = vpop.eup %237 }
  0x9a   :  { %v154_v30 = vadd.f32 %v238_v29, %v234_v26 }
  0x9c   :  { %v158_v33 = vadd.f32 %v236_v27, %v154_v30 }
  0x9e   :  { %v159_v35 = vmul.f32 10.0, %v158_v33 }
  0xa0   :  { %v162_v37 = vmul.f32 %v161_v34, %v159_v35 }
  0xa2   :  { %v163_v38 = vadd.f32 %v162_v37, %v160_v36 }
  0xa4   :  { %v167_v39 = vsel %vm166_vm1, %v163_v38, 0.0 }
  0xa5   :  { %168 = vadd.xlane.f32.xlu1 %v167_v39 }
 0x118   :  { %v169_v41 = vpop.xlane.xlu1 %168 }
 0x119   :  { %v170_v42 = vrot.slane %v169_v41, 4 }
 0x11b   :  { %v171_v43 = vadd.f32 %v170_v42, %v169_v41 }
 0x11d   :  { %v172_v44 = vrot.slane %v171_v43, 2 }
 0x11f   :  { %v173_v45 = vadd.f32 %v172_v44, %v171_v43 }
 0x121   :  { %v174_v46 = vrot.slane %v173_v45, 1 }
 0x123   :  { %v175_v47 = vadd.f32 %v174_v46, %v173_v45 }
 0x125   :  { %223 = vpush %v175_v47 }
 0x156   :  { %s224_s4 = spop %223 }
 0x157   :  { %v177_v50 = vstv %s224_s4 }
 0x158   :  { %v178_v51 = vadd.f32 %v177_v50, %v165_v49 }
 0x15a   :  { %180 = vst.msk [vmem:[#allocation2] sm:$0x1] %vm112_vm2, %v178_v51 }
 0x161   :  { %v184_v52 = vld [vmem:[#allocation2] sm:$0x1] }
 0x162   :  { %v185_v53 = vmul.f32 0.125, %v184_v52 }
 0x164   :  { %v187_v54 = vperm.slane %v185_v53, 0 }
 0x166   :  { %189 = vperm.xlu2 %231, %v187_v54  }
 0x1c0   :  { %v190_v55 = vpop.permute.xlu2 %189 }
 0x1c1   :  { %192 = vst [vmem:[#allocation9] sm:$0xff] %v190_v55 }
 0x1c2   :  { %203 = dma.vmem_to_hbm [thread:$0]  %s199_s9, 128, %s201_s12, [#allocation5]  }
 0x1c3   :  { %339 = dma.done.wait [#allocation5], 128  }
 0x1c4   :  { %340 = vsyncadd [#allocation5], 4294967168 }
 0x1c5   :  { %208 = vsyncpa [#allocation4], 1 }
 0x1c6   :  { %209 = vsyncpa [#allocation7], 1 }
 0x1c7   :  { %210 = vsyncpa [#allocation5], 1 }

</bundles_post_ra>
